<compile_context>
chip_gen: v7x
topology: tpu7x:2x2x1
jax: 0.10.0
libtpu: 0.0.40
codegen_flags: <defaults>
</compile_context>

<pallas_src>
import functools

import jax
import jax.numpy as jnp
from jax.experimental import pallas as pl
from jax.experimental.pallas import tpu as pltpu


_LANE = 128
_MAX_TILE_ROWS = 512    # sublane axis
_MAX_TILE_COLS = 1024   # lane axis; 512x1024 f32 = 2 MiB per tile


def _choose_tile(dim, align, max_tile):
    """Pick a tile size <= max_tile for one axis.

    Prefers (a) the full dim if it already fits (no (8,128) constraint when the
    block equals the array dim), then (b) the largest `align`-multiple that
    divides `dim` exactly (no padded tail block), else (c) the largest aligned
    tile (Pallas pads/masks the ragged tail block).
    """
    if dim <= max_tile:
        return dim
    cap = (max_tile // align) * align
    for t in range(cap, 0, -align):
        if dim % t == 0:
            return t
    return cap


def _fused_leaky_relu_kernel(x_ref, b_ref, o_ref, *, negative_slope, scale):
    # x_ref: (tile_rows, tile_cols); b_ref: (tile_rows, 1) or (1, tile_cols).
    x = x_ref[...].astype(jnp.float32)
    b = b_ref[...].astype(jnp.float32)
    y = x + b                                   # broadcast bias over lanes or sublanes
    out = jnp.where(y >= 0.0, y, y * negative_slope) * scale
    o_ref[...] = out.astype(o_ref.dtype)


def fused_leaky_relu(x, bias, negative_slope=0.2, scale=2 ** 0.5):
    """x: (N, C, H, W) array, bias: (C,) array. Returns same shape/dtype as x."""
    N, C, H, W = x.shape
    hw = H * W
    bias_f32 = bias.astype(jnp.float32)

    if hw % _LANE == 0:
        # Layout A: rows = N*C (one channel per row), cols = H*W (lane-dense).
        rows, cols = N * C, hw
        x2d = x.reshape(rows, cols)
        # Per-row bias column; tiny (N*C elements), broadcast is ~free.
        b2d = jnp.broadcast_to(bias_f32[None, :], (N, C)).reshape(rows, 1)
        bias_block = lambda tr, tc: (tr, 1)
        bias_map = lambda i, j: (i, 0)
    else:
        # Layout B (small / ragged spatial): rows = N, cols = C*H*W so the lane
        # axis stays wide instead of emitting a narrow masked-store last dim.
        rows, cols = N, C * hw
        x2d = x.reshape(rows, cols)
        # Per-column bias row: col c*hw + s -> bias[c].
        b2d = jnp.broadcast_to(bias_f32[:, None], (C, hw)).reshape(1, cols)
        bias_block = lambda tr, tc: (1, tc)
        bias_map = lambda i, j: (0, j)

    itemsize = jnp.dtype(x.dtype).itemsize
    sublane = max(8, 32 // itemsize)            # 8 for f32, 16 for bf16, 32 for i8
    tile_rows = _choose_tile(rows, sublane, _MAX_TILE_ROWS)
    tile_cols = _choose_tile(cols, _LANE, _MAX_TILE_COLS)
    grid = (pl.cdiv(rows, tile_rows), pl.cdiv(cols, tile_cols))

    kernel = functools.partial(
        _fused_leaky_relu_kernel,
        negative_slope=negative_slope,
        scale=scale,
    )

    n_bytes = rows * cols * itemsize
    cost = pl.CostEstimate(
        flops=3 * rows * cols,
        transcendentals=0,
        bytes_accessed=2 * n_bytes + b2d.size * 4,
    )

    out2d = pl.pallas_call(
        kernel,
        out_shape=jax.ShapeDtypeStruct((rows, cols), x.dtype),
        grid_spec=pltpu.PrefetchScalarGridSpec(
            num_scalar_prefetch=0,
            grid=grid,
            in_specs=[
                pl.BlockSpec((tile_rows, tile_cols), lambda i, j: (i, j)),
                pl.BlockSpec(bias_block(tile_rows, tile_cols), bias_map),
            ],
            out_specs=pl.BlockSpec((tile_rows, tile_cols), lambda i, j: (i, j)),
        ),
        compiler_params=pltpu.CompilerParams(
            dimension_semantics=("parallel", "parallel"),
        ),
        cost_estimate=cost,
    )(x2d, b2d)

    return out2d.reshape(N, C, H, W)


class FusedLeakyReLU:
    """JAX port of the PyTorch FusedLeakyReLU module (forward pass)."""

    def __init__(self, channel, negative_slope=0.2, scale=2 ** 0.5):
        # nn.Parameter(torch.zeros(channel)) -> deterministic zero init
        self.bias = jnp.zeros((channel,), dtype=jnp.float32)
        self.negative_slope = negative_slope
        self.scale = scale

    def __call__(self, x):
        return fused_leaky_relu(x, self.bias, self.negative_slope, self.scale)


def _reference(x, bias, negative_slope=0.2, scale=2 ** 0.5):
    y = x + bias.reshape(1, -1, 1, 1).astype(jnp.float32)
    return (jnp.where(y >= 0, y, y * negative_slope) * scale).astype(x.dtype)


if __name__ == "__main__":
    key = jax.random.PRNGKey(0)
    kx, kb, kx2, kb2 = jax.random.split(key, 4)

    # Case 1: H*W is a multiple of 128 -> (N*C, H*W) layout.
    N, C, H, W = 2, 4, 16, 16
    x = jax.random.normal(kx, (N, C, H, W), dtype=jnp.float32)
    module = FusedLeakyReLU(C)
    # Non-zero bias so broadcasting is actually exercised.
    module.bias = jax.random.normal(kb, (C,), dtype=jnp.float32)

    out = jax.block_until_ready(module(x))
    ref = _reference(x, module.bias, module.negative_slope, module.scale)
    assert out.shape == x.shape and out.dtype == x.dtype
    assert jnp.allclose(out, ref, atol=1e-6, rtol=1e-6)

    # Case 2: small spatial (H*W not a multiple of 128) -> (N, C*H*W) layout.
    N2, C2, H2, W2 = 2, 8, 4, 4
    x2 = jax.random.normal(kx2, (N2, C2, H2, W2), dtype=jnp.float32)
    b2 = jax.random.normal(kb2, (C2,), dtype=jnp.float32)
    out2 = jax.block_until_ready(fused_leaky_relu(x2, b2))
    ref2 = _reference(x2, b2)
    assert out2.shape == x2.shape and out2.dtype == x2.dtype
    assert jnp.allclose(out2, ref2, atol=1e-6, rtol=1e-6)

    print("KERNEL_OK")
</pallas_src>

<mosaic_0001>
module attributes {stable_mosaic.version = 11 : i64} {
  func.func @_fused_leaky_relu_kernel(%arg0: i32, %arg1: i32, %arg2: memref<8x256xf32, #tpu.memory_space<vmem>>, %arg3: memref<8x1xf32, #tpu.memory_space<vmem>>, %arg4: memref<8x256xf32, #tpu.memory_space<vmem>>) attributes {dimension_semantics = [#tpu.dimension_semantics<parallel>, #tpu.dimension_semantics<parallel>], iteration_bounds = array<i64: 1, 1>, scalar_prefetch = 0 : i64, scratch_operands = 0 : i64, tpu.core_type = #tpu.core_type<tc>, window_params = [{transform_indices = @transform_0, window_bounds = array<i64: 8, 256>}, {transform_indices = @transform_1, window_bounds = array<i64: 8, 1>}, {transform_indices = @transform_2, window_bounds = array<i64: 8, 256>}]} {
    %c0 = arith.constant 0 : index
    %c0_0 = arith.constant 0 : index
    %0 = vector.load %arg2[%c0, %c0_0] : memref<8x256xf32, #tpu.memory_space<vmem>>, vector<8x256xf32>
    %c0_1 = arith.constant 0 : index
    %c0_2 = arith.constant 0 : index
    %1 = vector.load %arg3[%c0_1, %c0_2] : memref<8x1xf32, #tpu.memory_space<vmem>>, vector<8x1xf32>
    %2 = vector.broadcast %1 : vector<8x1xf32> to vector<8x256xf32>
    %3 = arith.addf %0, %2 : vector<8x256xf32>
    %cst = arith.constant 0.000000e+00 : f32
    %4 = vector.broadcast %cst : f32 to vector<8x256xf32>
    %5 = arith.cmpf oge, %3, %4 : vector<8x256xf32>
    %cst_3 = arith.constant 2.000000e-01 : f32
    %6 = vector.broadcast %cst_3 : f32 to vector<8x256xf32>
    %7 = arith.mulf %3, %6 : vector<8x256xf32>
    %8 = arith.select %5, %3, %7 : vector<8x256xi1>, vector<8x256xf32>
    %cst_4 = arith.constant 1.41421354 : f32
    %9 = vector.broadcast %cst_4 : f32 to vector<8x256xf32>
    %10 = arith.mulf %8, %9 : vector<8x256xf32>
    %c0_5 = arith.constant 0 : index
    %c0_6 = arith.constant 0 : index
    %11 = vector.load %arg4[%c0_5, %c0_6] : memref<8x256xf32, #tpu.memory_space<vmem>>, vector<8x256xf32>
    tpu.vector_store %arg4[%c0_5, %c0_6], %10 {strides = array<i32>} : memref<8x256xf32, #tpu.memory_space<vmem>>, vector<8x256xf32>,
    return
  }
  func.func @transform_0(%arg0: i32, %arg1: i32) -> (i32, i32) {
    %c0_i32 = arith.constant 0 : i32
    return %arg0, %arg1 : i32, i32
  }
  func.func @transform_1(%arg0: i32, %arg1: i32) -> (i32, i32) {
    %c0_i32 = arith.constant 0 : i32
    %c0_i32_0 = arith.constant 0 : i32
    return %arg0, %c0_i32 : i32, i32
  }
  func.func @transform_2(%arg0: i32, %arg1: i32) -> (i32, i32) {
    %c0_i32 = arith.constant 0 : i32
    return %arg0, %arg1 : i32, i32
  }
}

</mosaic_0001>

<bundles_post_ra>
// kernel: tpu_custom_call.1
= control target key start
LH: loop header
LB: loop body
LE: loop exit
PB: predicated region body
PF: predicated region fallthrough
CT: control target
= control target key end

     0   :  { %7 = vsyncpa [#allocation3], 0  ;;  %s156_s0 = inlined_call_operand.hbm [shape: f32[8,256], index: 0, kind: input, shape index: {}]   ;;  %s157_s1 = inlined_call_operand.vmem [shape: f32[8,1], index: 1, kind: input, shape index: {}]   ;;  %s158_s2 = inlined_call_operand.hbm [shape: f32[8,256], index: 2, kind: output, shape index: {}]  }
   0x1   :  { %8 = vsyncpa [#allocation4], 0  ;;  %s111_s9 = smov [#allocation2]   ;;  %s63_s13 = scalar_lea.hbm %s156_s0, 256 }
   0x2   :  { %s15_s10 = sshll.u32 %s111_s9, 4  ;;  %p64_p0 = scmp.ne.s32.totalorder %s156_s0, %s63_s13  ;;  %s16_s10 = int_to_ptr.vmem [resolvable:$true] %s15_s10 }
   0x3   :  { %p67_p1 = scmp.lt.u32.totalorder %s63_s13, %s156_s0 }
   0x5   :  { %p69_p2 = pnand %p67_p1, %p64_p0 }
   0x7   :  { %72 = shalt.err (!%p69_p2)
}
   0x8   :  { %s73_s18 = scalar_lea.vmem %s16_s10, 256  ;;  %p78_p4 = scmp.lt.s32.totalorder %s16_s10, %s16_s10 }
   0x9   :  { %p74_p3 = scmp.ne.s32.totalorder %s16_s10, %s73_s18  ;;  %p79_p5 = scmp.lt.s32.totalorder %s73_s18, %s73_s18 }
   0xb   :  { %p80_p6 = por %p79_p5, %p78_p4 }
   0xd   :  { %p81_p7 = pnand %p80_p6, %p74_p3 }
   0xf   :  { %84 = shalt.err (!%p81_p7)
}
  0x10   :  { %18 = dma.hbm_to_vmem [thread:$0]  %s156_s0, 256, %s16_s10, [#allocation3]  }
  0x11   :  { %107 = dma.done.wait [#allocation3], 256  }
  0x12   :  { %108 = vsyncadd [#allocation3], 4294967040  ;;  %v112_v0 = vmov 0   ;;  %v26_v1 = vld [vmem:[%s157_s1] sm:$0xff]  ;;  %v25_v3 = vld [vmem:[#allocation2 + $0x8] sm:$0xff]  ;;  %s113_s23 = smov [#allocation5]  }
  0x13   :  { %62 = vset.pattern.permute.xlu0 %v112_v0  ;;  %v24_v2 = vld [vmem:[#allocation2] sm:$0xff]  ;;  %s50_s24 = sshll.u32 %s113_s23, 4  ;;  %s51_s24 = int_to_ptr.vmem [resolvable:$true] %s50_s24 }
  0x14   :  { %29 = vperm.xlu0 %62, %v26_v1   ;;  %s85_s0 = scalar_lea.vmem %s51_s24, 256  ;;  %p90_p9 = scmp.lt.s32.totalorder %s51_s24, %s51_s24 }
  0x15   :  { %p86_p8 = scmp.ne.s32.totalorder %s51_s24, %s85_s0  ;;  %p91_p10 = scmp.lt.s32.totalorder %s85_s0, %s85_s0 }
  0x17   :  { %p92_p11 = por %p91_p10, %p90_p9 }
  0x19   :  { %p93_p12 = pnand %p92_p11, %p86_p8 }
  0x93   :  { %v30_v4 = vpop.permute.xlu0 %29 }
  0x94   :  { %v32_v5 = vadd.f32 %v30_v4, %v24_v2  ;;  %v33_v6 = vadd.f32 %v30_v4, %v25_v3 }
  0x96   :  { %vm34_vm0 = vcmp.ge.f32.partialorder %v32_v5, 0.0  ;;  %vm35_vm1 = vcmp.ge.f32.partialorder %v33_v6, 0.0  ;;  %v36_v7 = vmul.f32 0.2, %v32_v5  ;;  %v37_v8 = vmul.f32 0.2, %v33_v6 }
  0x98   :  { %v38_v9 = vsel %vm34_vm0, %v32_v5, %v36_v7  ;;  %v39_v10 = vsel %vm35_vm1, %v33_v6, %v37_v8 }
  0x99   :  { %v40_v11 = vmul.f32 1.4142135, %v38_v9  ;;  %v41_v12 = vmul.f32 1.4142135, %v39_v10 }
  0x9b   :  { %42 = vst [vmem:[#allocation5] sm:$0xff] %v40_v11  ;;  %43 = vst [vmem:[#allocation5 + $0x8] sm:$0xff] %v41_v12 }
  0x9c   :  { %96 = shalt.err (!%p93_p12)
}
  0x9d   :  { %s97_s26 = scalar_lea.hbm %s158_s2, 256 }
  0x9e   :  { %p98_p13 = scmp.ne.s32.totalorder %s158_s2, %s97_s26  ;;  %p101_p0 = scmp.lt.u32.totalorder %s97_s26, %s158_s2 }
  0xa0   :  { %p103_p1 = pnand %p101_p0, %p98_p13 }
  0xa2   :  { %106 = shalt.err (!%p103_p1)
}
  0xa3   :  { %53 = dma.vmem_to_hbm [thread:$0]  %s51_s24, 256, %s158_s2, [#allocation4]  }
  0xa4   :  { %109 = dma.done.wait [#allocation4], 256  }
  0xa5   :  { %110 = vsyncadd [#allocation4], 4294967040 }
  0xa6   :  { %57 = vsyncpa [#allocation3], 1 }
  0xa7   :  { %58 = vsyncpa [#allocation4], 1 }

</bundles_post_ra>
